<compile_context>
chip_gen: v5e
topology: v5e:2x2
jax: 0.10.0
libtpu: 0.0.40
codegen_flags: <defaults>
</compile_context>

<pallas_src>
import math

import jax
import jax.numpy as jnp
from jax import lax
from jax.experimental import pallas as pl
from jax.experimental.pallas import tpu as pltpu

LANES = 128
SUBLANES = 8


def _tpu_kind() -> str:
    try:
        return jax.devices()[0].device_kind.lower()
    except Exception:
        return ""


def _tuning():
    """(max_cores, block_rows_max) per TPU generation."""
    kind = _tpu_kind()
    if "v7" in kind:
        # 2 TensorCores; 3.2 TB/s HBM needs big per-step tiles to amortize the
        # ~0.35 us per-grid-step overhead.
        return 2, 8192
    if "v6" in kind:
        # 32 MiB scoped-VMEM default comfortably fits 16 MiB of double-buffered
        # f32 streams.
        return 1, 8192
    # v5e & unknown: 16 MiB scoped-VMEM default -> cap at ~8 MiB of streams.
    return 1, 4096


def _sublane_pack(dtype) -> int:
    # Packed sublane tile height: 8 rows for 32-bit, 16 for 16-bit, 32 for 8-bit.
    itemsize = max(1, jnp.dtype(dtype).itemsize)
    return SUBLANES * max(1, 4 // itemsize)


def _make_bce_kernel(n_valid: int, block_rows: int, tiles_per_core: int):
    tile_elems = block_rows * LANES

    def kernel(x_ref, y_ref, o_ref):
        i = pl.program_id(0)   # core axis ("parallel")
        j = pl.program_id(1)   # reduction axis ("arbitrary")

        # Output block is resident across the reduction axis: init at j == 0.
        @pl.when(j == 0)
        def _():
            o_ref[...] = jnp.zeros_like(o_ref)

        # Widen in-kernel (HBM traffic stays at native dtype width).
        x = x_ref[...].astype(jnp.float32)
        y = y_ref[...].astype(jnp.float32)

        # Numerically-stable BCE-with-logits (matches torch BCEWithLogitsLoss):
        #   loss = max(x, 0) - x*y + log(1 + exp(-|x|))
        loss = jnp.maximum(x, 0.0) - x * y + jnp.log1p(jnp.exp(-jnp.abs(x)))
        # TODO(synk): with bf16 inputs on v7x the two EUP transcendentals per
        # element (exp + log1p) can become the binding slot; evaluate softplus
        # in bf16 there while keeping the f32 accumulate.

        # Un-clamped logical tile index (the index_map clamps for DMA safety;
        # masking here uses the un-clamped index so duplicated / out-of-range
        # tiles contribute exactly zero).
        t = i * tiles_per_core + j
        tile_start = t * tile_elems

        def reduce_to_vreg(v):
            # In-register tree reduce to one (8, 128) vreg: pure VALU adds,
            # no extra VMEM traffic.
            return v.reshape(block_rows // SUBLANES, SUBLANES, LANES).sum(axis=0)

        @pl.when(tile_start + tile_elems <= n_valid)
        def _():  # full tile: no masking work at all
            o_ref[...] += reduce_to_vreg(loss)

        @pl.when(tile_start + tile_elems > n_valid)
        def _():  # tail / duplicated tile: mask by global element index
            row = lax.broadcasted_iota(jnp.int32, (block_rows, LANES), 0)
            lane = lax.broadcasted_iota(jnp.int32, (block_rows, LANES), 1)
            gidx = tile_start + row * LANES + lane
            o_ref[...] += reduce_to_vreg(jnp.where(gidx < n_valid, loss, 0.0))

    return kernel


def binary_loss(model_output, targets):
    """BCEWithLogitsLoss(model_output, targets) with 'mean' reduction."""
    assert model_output.shape == targets.shape
    n_valid = int(math.prod(model_output.shape))

    ncores_max, block_rows_max = _tuning()

    x = model_output.reshape(-1)
    y = targets.reshape(-1)

    # Dtype-aware row quantum so DMA tiles are well-formed for packed dtypes.
    pack = max(_sublane_pack(x.dtype), _sublane_pack(y.dtype))
    row_quant = pack * LANES
    n_padded = -(-n_valid // row_quant) * row_quant
    if n_padded != n_valid:
        # Minimal pad (< pack*128 elements) so the lane-dense reshape is legal;
        # the padded tail contributes zero via the in-kernel mask.
        # TODO(synk): a tail staging buffer would avoid this copy for inputs
        # whose size is not already a multiple of pack*128.
        x = jnp.pad(x, (0, n_padded - n_valid))
        y = jnp.pad(y, (0, n_padded - n_valid))

    rows = n_padded // LANES
    block_rows = min(block_rows_max, rows)          # both multiples of `pack`
    tiles_total = -(-rows // block_rows)
    ncores = min(ncores_max, tiles_total)
    tiles_per_core = -(-tiles_total // ncores)

    x2 = x.reshape(rows, LANES)
    y2 = y.reshape(rows, LANES)

    def in_map(i, j):
        # Clamp so a possibly-duplicated trailing tile on the second core stays
        # in-bounds; its contribution is masked to zero inside the kernel.
        return (jnp.minimum(i * tiles_per_core + j, tiles_total - 1), 0)

    partials = pl.pallas_call(
        _make_bce_kernel(n_valid, block_rows, tiles_per_core),
        out_shape=jax.ShapeDtypeStruct((ncores * SUBLANES, LANES), jnp.float32),
        grid_spec=pltpu.PrefetchScalarGridSpec(
            num_scalar_prefetch=0,
            grid=(ncores, tiles_per_core),
            in_specs=[
                pl.BlockSpec((block_rows, LANES), in_map),
                pl.BlockSpec((block_rows, LANES), in_map),
            ],
            out_specs=pl.BlockSpec((SUBLANES, LANES), lambda i, j: (i, 0)),
        ),
        compiler_params=pltpu.CompilerParams(
            # Leading axis shards across TensorCores on multi-core parts
            # (pltpu.CORE_PARALLEL is an alternative on v7x if plain "parallel"
            # does not engage both cores); reduction axis must stay arbitrary.
            dimension_semantics=("parallel", "arbitrary")),
    )(x2, y2)

    # Tiny (<= 2 KiB per core) host-visible partials -> final mean in the wrapper.
    return jnp.sum(partials) / n_valid


if __name__ == "__main__":
    key = jax.random.PRNGKey(0)
    k1, k2, k3, k4 = jax.random.split(key, 4)

    def ref_bce(x, t):
        x = x.astype(jnp.float32)
        t = t.astype(jnp.float32)
        return jnp.mean(jnp.maximum(x, 0.0) - x * t
                        + jnp.log1p(jnp.exp(-jnp.abs(x))))

    # Segmentation-style use: NCHW = (2, 4, 16, 16)
    logits = jax.random.normal(k1, (2, 4, 16, 16), dtype=jnp.float32)
    targets = (jax.random.uniform(k2, (2, 4, 16, 16)) > 0.5).astype(jnp.float32)
    loss = binary_loss(logits, targets)
    jax.block_until_ready(loss)
    ref = ref_bce(logits, targets)
    assert jnp.allclose(loss, ref, rtol=1e-5, atol=1e-6), (loss, ref)

    # Ragged element count: exercises the minimal-pad + in-kernel tail-mask path.
    logits2 = jax.random.normal(k3, (3, 5, 7), dtype=jnp.float32)
    targets2 = (jax.random.uniform(k4, (3, 5, 7)) > 0.5).astype(jnp.float32)
    loss2 = binary_loss(logits2, targets2)
    jax.block_until_ready(loss2)
    ref2 = ref_bce(logits2, targets2)
    assert jnp.allclose(loss2, ref2, rtol=1e-5, atol=1e-6), (loss2, ref2)

    print("KERNEL_OK")
</pallas_src>

<mosaic_0001>
module attributes {stable_mosaic.version = 11 : i64} {
  func.func @kernel(%arg0: i32, %arg1: i32, %arg2: memref<16x128xf32, #tpu.memory_space<vmem>>, %arg3: memref<16x128xf32, #tpu.memory_space<vmem>>, %arg4: memref<8x128xf32, #tpu.memory_space<vmem>>) attributes {dimension_semantics = [#tpu.dimension_semantics<parallel>, #tpu.dimension_semantics<arbitrary>], iteration_bounds = array<i64: 1, 1>, scalar_prefetch = 0 : i64, scratch_operands = 0 : i64, tpu.core_type = #tpu.core_type<tc>, window_params = [{transform_indices = @transform_0, window_bounds = array<i64: 16, 128>}, {transform_indices = @transform_1, window_bounds = array<i64: 16, 128>}, {transform_indices = @transform_2, window_bounds = array<i64: 8, 128>}]} {
    %c0_i32 = arith.constant 0 : i32
    %0 = arith.cmpi eq, %arg1, %c0_i32 : i32
    %1 = arith.extui %0 : i1 to i32
    %c0_i32_0 = arith.constant 0 : i32
    %2 = arith.cmpi ne, %1, %c0_i32_0 : i32
    scf.if %2 {
      %cst_11 = arith.constant 0.000000e+00 : f32
      %26 = vector.broadcast %cst_11 : f32 to vector<8x128xf32>
      %c0_12 = arith.constant 0 : index
      %c0_13 = arith.constant 0 : index
      %27 = vector.load %arg4[%c0_12, %c0_13] : memref<8x128xf32, #tpu.memory_space<vmem>>, vector<8x128xf32>
      tpu.vector_store %arg4[%c0_12, %c0_13], %26 {strides = array<i32>} : memref<8x128xf32, #tpu.memory_space<vmem>>, vector<8x128xf32>,
    } else {
    }
    %c0 = arith.constant 0 : index
    %c0_1 = arith.constant 0 : index
    %3 = vector.load %arg2[%c0, %c0_1] : memref<16x128xf32, #tpu.memory_space<vmem>>, vector<16x128xf32>
    %c0_2 = arith.constant 0 : index
    %c0_3 = arith.constant 0 : index
    %4 = vector.load %arg3[%c0_2, %c0_3] : memref<16x128xf32, #tpu.memory_space<vmem>>, vector<16x128xf32>
    %cst = arith.constant 0.000000e+00 : f32
    %5 = vector.broadcast %cst : f32 to vector<16x128xf32>
    %6 = arith.maximumf %3, %5 : vector<16x128xf32>
    %7 = arith.mulf %3, %4 : vector<16x128xf32>
    %8 = arith.subf %6, %7 : vector<16x128xf32>
    %9 = math.absf %3 : vector<16x128xf32>
    %cst_4 = arith.constant 0.000000e+00 : f32
    %10 = vector.broadcast %cst_4 : f32 to vector<16x128xf32>
    %11 = arith.subf %10, %9 : vector<16x128xf32>
    %12 = math.exp %11 : vector<16x128xf32>
    %13 = math.log1p %12 : vector<16x128xf32>
    %14 = arith.addf %8, %13 : vector<16x128xf32>
    %c1_i32 = arith.constant 1 : i32
    %15 = arith.muli %arg0, %c1_i32 : i32
    %16 = arith.addi %15, %arg1 : i32
    %c2048_i32 = arith.constant 2048 : i32
    %17 = arith.muli %16, %c2048_i32 : i32
    %c2048_i32_5 = arith.constant 2048 : i32
    %18 = arith.addi %17, %c2048_i32_5 : i32
    %c2048_i32_6 = arith.constant 2048 : i32
    %19 = arith.cmpi sle, %18, %c2048_i32_6 : i32
    %20 = arith.extui %19 : i1 to i32
    %c0_i32_7 = arith.constant 0 : i32
    %21 = arith.cmpi ne, %20, %c0_i32_7 : i32
    scf.if %21 {
      %c0_11 = arith.constant 0 : index
      %c0_12 = arith.constant 0 : index
      %26 = vector.load %arg4[%c0_11, %c0_12] : memref<8x128xf32, #tpu.memory_space<vmem>>, vector<8x128xf32>
      %27 = vector.shape_cast %14 : vector<16x128xf32> to vector<2x8x128xf32>
      %cst_13 = arith.constant dense<0.000000e+00> : vector<8x128xf32>
      %28 = vector.multi_reduction <add>, %27, %cst_13 [0] : vector<2x8x128xf32> to vector<8x128xf32>
      %29 = arith.addf %26, %28 : vector<8x128xf32>
      %c0_14 = arith.constant 0 : index
      %c0_15 = arith.constant 0 : index
      %30 = vector.load %arg4[%c0_14, %c0_15] : memref<8x128xf32, #tpu.memory_space<vmem>>, vector<8x128xf32>
      tpu.vector_store %arg4[%c0_14, %c0_15], %29 {strides = array<i32>} : memref<8x128xf32, #tpu.memory_space<vmem>>, vector<8x128xf32>,
    } else {
    }
    %c2048_i32_8 = arith.constant 2048 : i32
    %22 = arith.addi %17, %c2048_i32_8 : i32
    %c2048_i32_9 = arith.constant 2048 : i32
    %23 = arith.cmpi sgt, %22, %c2048_i32_9 : i32
    %24 = arith.extui %23 : i1 to i32
    %c0_i32_10 = arith.constant 0 : i32
    %25 = arith.cmpi ne, %24, %c0_i32_10 : i32
    scf.if %25 {
      %26 = tpu.iota {dimensions = array<i32: 0>} : vector<16x128xi32>
      %27 = tpu.iota {dimensions = array<i32: 1>} : vector<16x128xi32>
      %c128_i32 = arith.constant 128 : i32
      %28 = vector.broadcast %c128_i32 : i32 to vector<16x128xi32>
      %29 = arith.muli %26, %28 : vector<16x128xi32>
      %30 = vector.broadcast %17 : i32 to vector<16x128xi32>
      %31 = arith.addi %30, %29 : vector<16x128xi32>
      %32 = arith.addi %31, %27 : vector<16x128xi32>
      %c0_11 = arith.constant 0 : index
      %c0_12 = arith.constant 0 : index
      %33 = vector.load %arg4[%c0_11, %c0_12] : memref<8x128xf32, #tpu.memory_space<vmem>>, vector<8x128xf32>
      %c2048_i32_13 = arith.constant 2048 : i32
      %34 = vector.broadcast %c2048_i32_13 : i32 to vector<16x128xi32>
      %35 = arith.cmpi slt, %32, %34 : vector<16x128xi32>
      %cst_14 = arith.constant 0.000000e+00 : f32
      %36 = vector.broadcast %cst_14 : f32 to vector<16x128xf32>
      %37 = arith.select %35, %14, %36 : vector<16x128xi1>, vector<16x128xf32>
      %38 = vector.shape_cast %37 : vector<16x128xf32> to vector<2x8x128xf32>
      %cst_15 = arith.constant dense<0.000000e+00> : vector<8x128xf32>
      %39 = vector.multi_reduction <add>, %38, %cst_15 [0] : vector<2x8x128xf32> to vector<8x128xf32>
      %40 = arith.addf %33, %39 : vector<8x128xf32>
      %c0_16 = arith.constant 0 : index
      %c0_17 = arith.constant 0 : index
      %41 = vector.load %arg4[%c0_16, %c0_17] : memref<8x128xf32, #tpu.memory_space<vmem>>, vector<8x128xf32>
      tpu.vector_store %arg4[%c0_16, %c0_17], %40 {strides = array<i32>} : memref<8x128xf32, #tpu.memory_space<vmem>>, vector<8x128xf32>,
    } else {
    }
    return
  }
  func.func @transform_0(%arg0: i32, %arg1: i32) -> (i32, i32) {
    %c1_i32 = arith.constant 1 : i32
    %0 = arith.muli %arg0, %c1_i32 : i32
    %1 = arith.addi %0, %arg1 : i32
    %c0_i32 = arith.constant 0 : i32
    %2 = arith.minsi %1, %c0_i32 : i32
    %c0_i32_0 = arith.constant 0 : i32
    %c0_i32_1 = arith.constant 0 : i32
    return %2, %c0_i32_0 : i32, i32
  }
  func.func @transform_1(%arg0: i32, %arg1: i32) -> (i32, i32) {
    %c1_i32 = arith.constant 1 : i32
    %0 = arith.muli %arg0, %c1_i32 : i32
    %1 = arith.addi %0, %arg1 : i32
    %c0_i32 = arith.constant 0 : i32
    %2 = arith.minsi %1, %c0_i32 : i32
    %c0_i32_0 = arith.constant 0 : i32
    %c0_i32_1 = arith.constant 0 : i32
    return %2, %c0_i32_0 : i32, i32
  }
  func.func @transform_2(%arg0: i32, %arg1: i32) -> (i32, i32) {
    %c0_i32 = arith.constant 0 : i32
    %c0_i32_0 = arith.constant 0 : i32
    return %arg0, %c0_i32 : i32, i32
  }
}

</mosaic_0001>

<bundles_post_ra>
// kernel: tpu_custom_call.1
= control target key start
LH: loop header
LB: loop body
LE: loop exit
PB: predicated region body
PF: predicated region fallthrough
CT: control target
= control target key end

     0   :  { %7 = vsyncpa [#allocation3], 0  ;;  %s285_s0 = inlined_call_operand.hbm [shape: f32[16,128], index: 0, kind: input, shape index: {}]   ;;  %s286_s1 = inlined_call_operand.hbm [shape: f32[16,128], index: 1, kind: input, shape index: {}]   ;;  %s287_s2 = inlined_call_operand.hbm [shape: f32[8,128], index: 2, kind: output, shape index: {}]  }
   0x1   :  { %8 = vsyncpa [#allocation6], 0 }
   0x2   :  { %9 = vsyncpa [#allocation4], 0  ;;  %s20_s11 = sshll.u32 %s285_s0, 4  ;;  %s256_s12 = smov [#allocation2]   ;;  %s21_s11 = int_to_ptr.hbm [resolvable:$true] %s20_s11 }
   0x3   :  { %s22_s13 = sshll.u32 %s256_s12, 4  ;;  %s39_s16 = sshll.u32 %s286_s1, 4  ;;  %s23_s13 = int_to_ptr.vmem [resolvable:$true] %s22_s13  ;;  %s40_s16 = int_to_ptr.hbm [resolvable:$true] %s39_s16 }
   0x4   :  { %s257_s17 = smov 128   ;;  %s258_s18 = smov 8  }
   0x5   :  { %28 = dma.hbm_to_vmem [thread:$0]  %s21_s11, 256, %s23_s13, [#allocation3], %s257_s17, %s257_s17, %s258_s18  }
   0x6   :  { %s259_s19 = smov [#allocation5]  }
   0x7   :  { %s41_s20 = sshll.u32 %s259_s19, 4  ;;  %s42_s20 = int_to_ptr.vmem [resolvable:$true] %s41_s20 }
   0x8   :  { %47 = dma.hbm_to_vmem [thread:$0]  %s40_s16, 256, %s42_s20, [#allocation6], %s257_s17, %s257_s17, %s258_s18  }
   0x9   :  { %250 = dma.done.wait [#allocation3], 256  }
   0xa   :  { %251 = vsyncadd [#allocation3], 4294967040 }
   0xb   :  { %252 = dma.done.wait [#allocation6], 256  }
   0xc   :  { %253 = vsyncadd [#allocation6], 4294967040  ;;  %v69_v0 = vld [vmem:[#allocation2] sm:$0xff]  ;;  %v70_v1 = vld [vmem:[#allocation2 + $0x8] sm:$0xff]  ;;  %s260_s0 = smov [#allocation7]   ;;  %s149_s23 = sshll.u32 %s287_s2, 4  ;;  %s150_s23 = int_to_ptr.hbm [resolvable:$true] %s149_s23 }
   0xd   :  { %v79_v2 = vand.u32 2147483647, %v69_v0  ;;  %v80_v3 = vand.u32 2147483647, %v70_v1  ;;  %v71_v12 = vld [vmem:[#allocation5] sm:$0xff]  ;;  %v72_v15 = vld [vmem:[#allocation5 + $0x8] sm:$0xff] }
   0xe   :  { %v73_v17 = vmax.f32 %v69_v0, 0.0  ;;  %v75_v18 = vmul.f32 %v71_v12, %v69_v0  ;;  %v74_v21 = vmax.f32 %v70_v1, 0.0  ;;  %v76_v22 = vmul.f32 %v72_v15, %v70_v1  ;;  %s147_s1 = sshll.u32 %s260_s0, 4  ;;  %s148_s1 = int_to_ptr.vmem [resolvable:$true] %s147_s1 }
   0xf   :  { %v81_v4 = vsub.f32 0.0, %v79_v2  ;;  %v82_v5 = vsub.f32 0.0, %v80_v3 }
  0x10   :  { %v77_v26 = vsub.f32 %v73_v17, %v75_v18  ;;  %v78_v29 = vsub.f32 %v74_v21, %v76_v22 }
  0x11   :  { %v83_v6 = vmul.f32 1.442695, %v81_v4  ;;  %v85_v7 = vmul.f32 1.442695, %v82_v5 }
  0x13   :  { %170 = vpow2.f32 %v83_v6 }
  0x14   :  { %172 = vpow2.f32 %v85_v7 }
  0x19   :  { %v171_v8 = vpop.eup %170 }
  0x1a   :  { %v173_v9 = vpop.eup %172  ;;  %v87_v10 = vadd.f32 1.0, %v171_v8  ;;  %v90_v11 = vmul.f32 -0.5, %v171_v8  ;;  %v93_v19 = vand.u32 2147483647, %v171_v8 }
  0x1b   :  { %v96_v13 = vadd.f32 1.0, %v173_v9  ;;  %v99_v14 = vmul.f32 -0.5, %v173_v9  ;;  %v102_v23 = vand.u32 2147483647, %v173_v9 }
  0x1c   :  { %174 = vlog2.f32 %v87_v10  ;;  %v91_v16 = vadd.f32 1.0, %v90_v11  ;;  %vm94_vm0 = vcmp.lt.f32.partialorder %v93_v19, 0.0004427343 }
  0x1d   :  { %176 = vlog2.f32 %v96_v13  ;;  %v100_v20 = vadd.f32 1.0, %v99_v14  ;;  %vm103_vm1 = vcmp.lt.f32.partialorder %v102_v23, 0.0004427343 }
  0x1e   :  { %v92_v24 = vmul.f32 %v171_v8, %v91_v16 }
  0x1f   :  { %v101_v27 = vmul.f32 %v173_v9, %v100_v20 }
  0x22   :  { %v175_v25 = vpop.eup %174 }
  0x23   :  { %v177_v28 = vpop.eup %176  ;;  %v89_v30 = vmul.f32 0.6931472, %v175_v25 }
  0x24   :  { %v98_v31 = vmul.f32 0.6931472, %v177_v28 }
  0x25   :  { %v95_v32 = vsel %vm94_vm0, %v92_v24, %v89_v30 }
  0x26   :  { %v104_v33 = vsel %vm103_vm1, %v101_v27, %v98_v31  ;;  %v105_v34 = vadd.f32 %v95_v32, %v77_v26 }
  0x27   :  { %v106_v35 = vadd.f32 %v104_v33, %v78_v29 }
  0x29   :  { %v115_v36 = vadd.f32 %v106_v35, %v105_v34 }
  0x2b   :  { %117 = vst [vmem:[#allocation7] sm:$0xff] %v115_v36 }
  0x2c   :  { %152 = dma.vmem_to_hbm [thread:$0]  %s148_s1, 128, %s150_s23, [#allocation4]  }
  0x2d   :  { %254 = dma.done.wait [#allocation4], 128  }
  0x2e   :  { %255 = vsyncadd [#allocation4], 4294967168 }
  0x2f   :  { %157 = vsyncpa [#allocation3], 1 }
  0x30   :  { %158 = vsyncpa [#allocation6], 1 }
  0x31   :  { %159 = vsyncpa [#allocation4], 1 }

</bundles_post_ra>
